<compile_context>
chip_gen: v7x
topology: tpu7x:2x2x1
jax: 0.10.0
libtpu: 0.0.40
codegen_flags: <defaults>
</compile_context>

<pallas_src>
import functools

import jax
import jax.numpy as jnp
from jax.experimental import pallas as pl
from jax.experimental.pallas import tpu as pltpu


def _round_up(x, m):
    return ((x + m - 1) // m) * m


def _smdecoder_kernel(x_ref, w_max_ref, w_mean_ref, b_ref, o_ref,
                      max_acc, sum_acc, *, fold, h, inv_total_t):
    # x_ref:      [Bb, Ts, Lm]  (native dtype; Lm = fold*H, lane-dense)
    # w_*_ref:    [H, Np]       (zero-padded output columns)
    # b_ref:      [1, Np]       (f32)
    # o_ref:      [Bb, Np]
    # max_acc/sum_acc: [Bb, Lm] f32 VMEM scratch (persist across the T axis)
    t = pl.program_id(1)
    last_t = pl.num_programs(1) - 1

    @pl.when(t == 0)
    def _():
        max_acc[...] = jnp.full_like(max_acc, -jnp.inf)
        sum_acc[...] = jnp.zeros_like(sum_acc)

    x = x_ref[...]                                        # [Bb, Ts, Lm]
    # Running reductions over the (folded) sequence axis; the sum upcast is
    # fused into the reduction (no materialized f32 copy of the block).
    max_acc[...] = jnp.maximum(max_acc[...],
                               jnp.max(x, axis=1).astype(jnp.float32))
    sum_acc[...] = sum_acc[...] + jnp.sum(x, axis=1, dtype=jnp.float32)

    @pl.when(t == last_t)
    def _():
        bb = max_acc.shape[0]
        mx = max_acc[...]
        sm = sum_acc[...]
        if fold > 1:
            # Collapse the lane-folded timestep groups once (XLU, per batch block).
            mx = jnp.max(mx.reshape(bb, fold, h), axis=1)
            sm = jnp.sum(sm.reshape(bb, fold, h), axis=1)
        mean = sm * inv_total_t
        # Split-weight matmul replaces cat((max, mean)) @ W.T:
        #   out = max @ W_max + mean @ W_mean   (no lane-axis concat).
        out = jnp.dot(mx.astype(w_max_ref.dtype), w_max_ref[...],
                      preferred_element_type=jnp.float32)
        out = out + jnp.dot(mean.astype(w_mean_ref.dtype), w_mean_ref[...],
                            preferred_element_type=jnp.float32)
        out = out + b_ref[...]                            # [1, Np] broadcasts
        # TODO(synk): dropout skipped (inference identity).
        o_ref[...] = jnp.maximum(out, 0.0).astype(o_ref.dtype)


def _vmem_config():
    """Generation-aware VMEM limit / block budget / grid-step target."""
    cap = 64 << 20                       # conservative default (v7x per-TC VMEM)
    try:
        info = pltpu.get_tpu_info()
        cap = int(getattr(info, "vmem_capacity_bytes", cap))
    except Exception:
        pass
    vmem_limit = min((cap * 3) // 4, 96 << 20)   # ~48 MiB v7x, ~96 MiB v5e/v6e
    budget = (vmem_limit * 4) // 5               # headroom for Mosaic internals
    # <= 64 MiB per core -> v7x-style chip with 2 TensorCores sharing the grid:
    # want >=2 parallel steps per core.  Single-TC chips: one big block is best
    # for this mem-bound kernel when it fits.
    target_steps = 4 if cap <= (64 << 20) else 1
    return vmem_limit, budget, target_steps


def _legal_blocks(total):
    """Block sizes legal for a second-to-last dim: multiples of 8, or the full dim."""
    return sorted({d for d in range(1, total + 1)
                   if total % d == 0 and (d % 8 == 0 or d == total)},
                  reverse=True)


def _pick_blocks(B, Tf, Lm, n_pad, x_itemsize, out_itemsize, fixed_bytes,
                 budget_bytes, target_steps, batch_block, seq_block):
    lm_pad = _round_up(Lm, 128)

    def block_bytes(bb, sb):
        bb_pad = _round_up(bb, 8)
        return (2 * bb * _round_up(sb, 8) * lm_pad * x_itemsize   # input (2 bufs)
                + 2 * bb_pad * n_pad * out_itemsize               # output (2 bufs)
                + 2 * bb_pad * lm_pad * 4                         # f32 accumulators
                + fixed_bytes)                                    # weights + bias

    if seq_block is None:
        cands = _legal_blocks(Tf)
        seq_block = cands[-1]
        for sb in cands:                       # largest seq block that fits
            if block_bytes(min(8, B), sb) <= budget_bytes:
                seq_block = sb
                break
    assert Tf % seq_block == 0
    seq_steps = Tf // seq_block

    if batch_block is None:
        cands = _legal_blocks(B)
        fitting = [bb for bb in cands if block_bytes(bb, seq_block) <= budget_bytes]
        if not fitting:
            fitting = [cands[-1]]

        def score(bb):
            steps = (B // bb) * seq_steps
            # enough steps for core sharding / pipelining first, then big blocks
            return (min(steps, target_steps), bb)

        batch_block = max(fitting, key=score)
    assert B % batch_block == 0
    return batch_block, seq_block


def prepare_fc1_params(w, b, sm_hidden_dtype=jnp.float32):
    """One-time fc1 prep (transpose, split into max/mean halves, lane-pad)."""
    out_dim, two_h = w.shape
    h = two_h // 2
    assert two_h == 2 * h, "fc1 weight must have shape [out_dim, 2*H]"
    n_pad = _round_up(out_dim, 128)
    pad = n_pad - out_dim
    w_dtype = (jnp.bfloat16 if jnp.dtype(sm_hidden_dtype) == jnp.bfloat16
               else jnp.float32)
    w_t = jnp.transpose(w).astype(w_dtype)            # [2H, out_dim]
    w_max_p = jnp.pad(w_t[:h], ((0, 0), (0, pad)))    # [H, Np]  (max half)
    w_mean_p = jnp.pad(w_t[h:], ((0, 0), (0, pad)))   # [H, Np]  (mean half)
    b_p = jnp.pad(b.astype(jnp.float32), (0, pad)).reshape(1, n_pad)
    return w_max_p, w_mean_p, b_p


def sm_decoder(sm_hidden, w, b, *, params=None, batch_block=None, seq_block=None):
    """sm_hidden: [B, T, H]; w: [out_dim, 2H] (PyTorch fc1.weight); b: [out_dim]."""
    B, T, H = sm_hidden.shape
    out_dim, two_h = w.shape
    assert two_h == 2 * H, "fc1 weight must have shape [out_dim, 2*H]"

    if params is None:                                 # hoist for repeated calls
        params = prepare_fc1_params(w, b, sm_hidden.dtype)
    w_max_p, w_mean_p, b_p = params
    n_pad = w_max_p.shape[1]

    # Lane folding: when H < 128 pack `fold` consecutive timesteps into one
    # 128-wide lane row (free, contiguous reshape) so the reduction uses full
    # vregs and the resident input block shrinks ~128/H x.
    fold = 1
    if H < 128 and 128 % H == 0 and T % (128 // H) == 0:
        fold = 128 // H
    Tf, Lm = T // fold, fold * H
    x = sm_hidden.reshape(B, Tf, Lm)

    x_itemsize = jnp.dtype(sm_hidden.dtype).itemsize
    out_itemsize = x_itemsize
    w_itemsize = jnp.dtype(w_max_p.dtype).itemsize
    fixed_bytes = (2 * 2 * H * n_pad * w_itemsize      # two weight halves, 2 bufs
                   + 2 * 8 * n_pad * 4)                # bias (8-sublane pad), 2 bufs

    vmem_limit, budget, target_steps = _vmem_config()
    batch_block, seq_block = _pick_blocks(
        B, Tf, Lm, n_pad, x_itemsize, out_itemsize, fixed_bytes, budget,
        target_steps, batch_block, seq_block)

    grid = (B // batch_block, Tf // seq_block)         # reduction axis last

    kernel = functools.partial(_smdecoder_kernel, fold=fold, h=H,
                               inv_total_t=1.0 / T)

    cost = pl.CostEstimate(
        flops=2 * B * T * H + 2 * B * (2 * H) * n_pad,
        transcendentals=0,
        bytes_accessed=(B * T * H * x_itemsize + 2 * H * n_pad * w_itemsize
                        + n_pad * 4 + B * n_pad * out_itemsize),
    )

    out_padded = pl.pallas_call(
        kernel,
        out_shape=jax.ShapeDtypeStruct((B, n_pad), sm_hidden.dtype),
        grid_spec=pltpu.PrefetchScalarGridSpec(
            num_scalar_prefetch=0,
            grid=grid,
            in_specs=[
                pl.BlockSpec((batch_block, seq_block, Lm), lambda i, t: (i, t, 0)),
                pl.BlockSpec((H, n_pad), lambda i, t: (0, 0)),
                pl.BlockSpec((H, n_pad), lambda i, t: (0, 0)),
                pl.BlockSpec((1, n_pad), lambda i, t: (0, 0)),
            ],
            out_specs=pl.BlockSpec((batch_block, n_pad), lambda i, t: (i, 0)),
            scratch_shapes=[
                pltpu.VMEM((batch_block, Lm), jnp.float32),   # running max
                pltpu.VMEM((batch_block, Lm), jnp.float32),   # running sum
            ],
        ),
        compiler_params=pltpu.CompilerParams(
            dimension_semantics=("parallel", "arbitrary"),
            vmem_limit_bytes=vmem_limit,
        ),
        cost_estimate=cost,
    )(x, w_max_p, w_mean_p, b_p)

    return out_padded[:, :out_dim]


def reference(sm_hidden, w, b):
    out_mean = jnp.mean(sm_hidden, axis=1)
    out_max = jnp.max(sm_hidden, axis=1)
    feat = jnp.concatenate([out_max, out_mean], axis=-1)
    return jnp.maximum(feat @ jnp.transpose(w) + b, 0.0)


if __name__ == "__main__":
    # Module hyperparameters (small, consistent with the forward pass).
    batch = 16
    seq = 8              # sequence length reduced over (dim=1)
    sm_hidden_dim = 32   # H  (fold = 128 // 32 = 4 -> lane-dense [16, 2, 128] input)
    out_dim = 16
    drop_p = 0.1         # unused at inference

    key = jax.random.PRNGKey(0)
    k_x, k_w, k_b = jax.random.split(key, 3)

    sm_hidden = jax.random.normal(k_x, (batch, seq, sm_hidden_dim),
                                  dtype=jnp.float32)

    # fc1 = nn.Linear(2H, out_dim): weight [out_dim, 2H], bias [out_dim]
    fan_in = 2 * sm_hidden_dim
    bound = 1.0 / (fan_in ** 0.5)
    w = jax.random.uniform(k_w, (out_dim, fan_in), jnp.float32, -bound, bound)
    b = jax.random.uniform(k_b, (out_dim,), jnp.float32, -bound, bound)

    # One-time fc1 preprocessing hoisted out of the per-call path.
    params = prepare_fc1_params(w, b, sm_hidden.dtype)

    out = sm_decoder(sm_hidden, w, b, params=params)
    out = jax.block_until_ready(out)

    ref = reference(sm_hidden, w, b)
    assert out.shape == (batch, out_dim)
    assert jnp.allclose(out, ref, atol=1e-5, rtol=1e-5), "mismatch vs reference"

    print("KERNEL_OK")
</pallas_src>

<mosaic_0001>
module attributes {stable_mosaic.version = 11 : i64} {
  func.func @_smdecoder_kernel(%arg0: i32, %arg1: i32, %arg2: memref<8x2x128xf32, #tpu.memory_space<vmem>>, %arg3: memref<32x128xf32, #tpu.memory_space<vmem>>, %arg4: memref<32x128xf32, #tpu.memory_space<vmem>>, %arg5: memref<1x128xf32, #tpu.memory_space<vmem>>, %arg6: memref<8x128xf32, #tpu.memory_space<vmem>>, %arg7: memref<8x128xf32, #tpu.memory_space<vmem>>, %arg8: memref<8x128xf32, #tpu.memory_space<vmem>>) attributes {dimension_semantics = [#tpu.dimension_semantics<parallel>, #tpu.dimension_semantics<arbitrary>], iteration_bounds = array<i64: 2, 1>, scalar_prefetch = 0 : i64, scratch_operands = 2 : i64, tpu.core_type = #tpu.core_type<tc>, window_params = [{transform_indices = @transform_0, window_bounds = array<i64: 8, 2, 128>}, {pipeline_mode = #tpu.pipeline_mode<synchronous>, transform_indices = @transform_1, window_bounds = array<i64: 32, 128>}, {pipeline_mode = #tpu.pipeline_mode<synchronous>, transform_indices = @transform_2, window_bounds = array<i64: 32, 128>}, {pipeline_mode = #tpu.pipeline_mode<synchronous>, transform_indices = @transform_3, window_bounds = array<i64: 1, 128>}, {transform_indices = @transform_4, window_bounds = array<i64: 8, 128>}]} {
    %c0_i32 = arith.constant 0 : i32
    %0 = arith.cmpi eq, %arg1, %c0_i32 : i32
    %1 = arith.extui %0 : i1 to i32
    %c0_i32_0 = arith.constant 0 : i32
    %2 = arith.cmpi ne, %1, %c0_i32_0 : i32
    scf.if %2 {
      %cst_14 = arith.constant 0xFF800000 : f32
      %15 = vector.broadcast %cst_14 : f32 to vector<8x128xf32>
      %c0_15 = arith.constant 0 : index
      %c0_16 = arith.constant 0 : index
      %16 = vector.load %arg7[%c0_15, %c0_16] : memref<8x128xf32, #tpu.memory_space<vmem>>, vector<8x128xf32>
      tpu.vector_store %arg7[%c0_15, %c0_16], %15 {strides = array<i32>} : memref<8x128xf32, #tpu.memory_space<vmem>>, vector<8x128xf32>,
      %cst_17 = arith.constant 0.000000e+00 : f32
      %17 = vector.broadcast %cst_17 : f32 to vector<8x128xf32>
      %c0_18 = arith.constant 0 : index
      %c0_19 = arith.constant 0 : index
      %18 = vector.load %arg8[%c0_18, %c0_19] : memref<8x128xf32, #tpu.memory_space<vmem>>, vector<8x128xf32>
      tpu.vector_store %arg8[%c0_18, %c0_19], %17 {strides = array<i32>} : memref<8x128xf32, #tpu.memory_space<vmem>>, vector<8x128xf32>,
    } else {
    }
    %c0 = arith.constant 0 : index
    %c0_1 = arith.constant 0 : index
    %c0_2 = arith.constant 0 : index
    %3 = vector.load %arg2[%c0, %c0_1, %c0_2] : memref<8x2x128xf32, #tpu.memory_space<vmem>>, vector<8x2x128xf32>
    %c0_3 = arith.constant 0 : index
    %c0_4 = arith.constant 0 : index
    %4 = vector.load %arg7[%c0_3, %c0_4] : memref<8x128xf32, #tpu.memory_space<vmem>>, vector<8x128xf32>
    %cst = arith.constant dense<0xFF800000> : vector<8x128xf32>
    %5 = vector.multi_reduction <maximumf>, %3, %cst [1] : vector<8x2x128xf32> to vector<8x128xf32>
    %6 = arith.maximumf %4, %5 : vector<8x128xf32>
    %c0_5 = arith.constant 0 : index
    %c0_6 = arith.constant 0 : index
    %7 = vector.load %arg7[%c0_5, %c0_6] : memref<8x128xf32, #tpu.memory_space<vmem>>, vector<8x128xf32>
    tpu.vector_store %arg7[%c0_5, %c0_6], %6 {strides = array<i32>} : memref<8x128xf32, #tpu.memory_space<vmem>>, vector<8x128xf32>,
    %c0_7 = arith.constant 0 : index
    %c0_8 = arith.constant 0 : index
    %8 = vector.load %arg8[%c0_7, %c0_8] : memref<8x128xf32, #tpu.memory_space<vmem>>, vector<8x128xf32>
    %cst_9 = arith.constant dense<0.000000e+00> : vector<8x128xf32>
    %9 = vector.multi_reduction <add>, %3, %cst_9 [1] : vector<8x2x128xf32> to vector<8x128xf32>
    %10 = arith.addf %8, %9 : vector<8x128xf32>
    %c0_10 = arith.constant 0 : index
    %c0_11 = arith.constant 0 : index
    %11 = vector.load %arg8[%c0_10, %c0_11] : memref<8x128xf32, #tpu.memory_space<vmem>>, vector<8x128xf32>
    tpu.vector_store %arg8[%c0_10, %c0_11], %10 {strides = array<i32>} : memref<8x128xf32, #tpu.memory_space<vmem>>, vector<8x128xf32>,
    %c0_i32_12 = arith.constant 0 : i32
    %12 = arith.cmpi eq, %arg1, %c0_i32_12 : i32
    %13 = arith.extui %12 : i1 to i32
    %c0_i32_13 = arith.constant 0 : i32
    %14 = arith.cmpi ne, %13, %c0_i32_13 : i32
    scf.if %14 {
      %c0_14 = arith.constant 0 : index
      %c0_15 = arith.constant 0 : index
      %15 = vector.load %arg7[%c0_14, %c0_15] : memref<8x128xf32, #tpu.memory_space<vmem>>, vector<8x128xf32>
      %c0_16 = arith.constant 0 : index
      %c0_17 = arith.constant 0 : index
      %16 = vector.load %arg8[%c0_16, %c0_17] : memref<8x128xf32, #tpu.memory_space<vmem>>, vector<8x128xf32>
      %17 = vector.shape_cast %15 : vector<8x128xf32> to vector<8x4x32xf32>
      %cst_18 = arith.constant dense<0xFF800000> : vector<8x32xf32>
      %18 = vector.multi_reduction <maximumf>, %17, %cst_18 [1] : vector<8x4x32xf32> to vector<8x32xf32>
      %19 = vector.shape_cast %16 : vector<8x128xf32> to vector<8x4x32xf32>
      %cst_19 = arith.constant dense<0.000000e+00> : vector<8x32xf32>
      %20 = vector.multi_reduction <add>, %19, %cst_19 [1] : vector<8x4x32xf32> to vector<8x32xf32>
      %cst_20 = arith.constant 1.250000e-01 : f32
      %21 = vector.broadcast %cst_20 : f32 to vector<8x32xf32>
      %22 = arith.mulf %20, %21 : vector<8x32xf32>
      %c0_21 = arith.constant 0 : index
      %c0_22 = arith.constant 0 : index
      %23 = vector.load %arg3[%c0_21, %c0_22] : memref<32x128xf32, #tpu.memory_space<vmem>>, vector<32x128xf32>
      %cst_23 = arith.constant dense<0.000000e+00> : vector<8x128xf32>
      %24 = tpu.matmul %18, %23, %cst_23 {dimension_numbers = #tpu.dot_dimension_numbers<[1], [0], [0], [1], [0, 0, 1, 1], [], []>} : vector<8x32xf32>, vector<32x128xf32>, vector<8x128xf32> -> vector<8x128xf32>
      %c0_24 = arith.constant 0 : index
      %c0_25 = arith.constant 0 : index
      %25 = vector.load %arg4[%c0_24, %c0_25] : memref<32x128xf32, #tpu.memory_space<vmem>>, vector<32x128xf32>
      %cst_26 = arith.constant dense<0.000000e+00> : vector<8x128xf32>
      %26 = tpu.matmul %22, %25, %cst_26 {dimension_numbers = #tpu.dot_dimension_numbers<[1], [0], [0], [1], [0, 0, 1, 1], [], []>} : vector<8x32xf32>, vector<32x128xf32>, vector<8x128xf32> -> vector<8x128xf32>
      %27 = arith.addf %24, %26 : vector<8x128xf32>
      %c0_27 = arith.constant 0 : index
      %c0_28 = arith.constant 0 : index
      %28 = vector.load %arg5[%c0_27, %c0_28] : memref<1x128xf32, #tpu.memory_space<vmem>>, vector<1x128xf32>
      %29 = vector.broadcast %28 : vector<1x128xf32> to vector<8x128xf32>
      %30 = arith.addf %27, %29 : vector<8x128xf32>
      %cst_29 = arith.constant 0.000000e+00 : f32
      %31 = vector.broadcast %cst_29 : f32 to vector<8x128xf32>
      %32 = arith.maximumf %30, %31 : vector<8x128xf32>
      %c0_30 = arith.constant 0 : index
      %c0_31 = arith.constant 0 : index
      %33 = vector.load %arg6[%c0_30, %c0_31] : memref<8x128xf32, #tpu.memory_space<vmem>>, vector<8x128xf32>
      tpu.vector_store %arg6[%c0_30, %c0_31], %32 {strides = array<i32>} : memref<8x128xf32, #tpu.memory_space<vmem>>, vector<8x128xf32>,
    } else {
    }
    return
  }
  func.func @transform_0(%arg0: i32, %arg1: i32) -> (i32, i32, i32) {
    %c0_i32 = arith.constant 0 : i32
    %c0_i32_0 = arith.constant 0 : i32
    return %arg0, %arg1, %c0_i32 : i32, i32, i32
  }
  func.func @transform_1(%arg0: i32, %arg1: i32) -> (i32, i32) {
    %c0_i32 = arith.constant 0 : i32
    %c0_i32_0 = arith.constant 0 : i32
    %c0_i32_1 = arith.constant 0 : i32
    return %c0_i32, %c0_i32_0 : i32, i32
  }
  func.func @transform_2(%arg0: i32, %arg1: i32) -> (i32, i32) {
    %c0_i32 = arith.constant 0 : i32
    %c0_i32_0 = arith.constant 0 : i32
    %c0_i32_1 = arith.constant 0 : i32
    return %c0_i32, %c0_i32_0 : i32, i32
  }
  func.func @transform_3(%arg0: i32, %arg1: i32) -> (i32, i32) {
    %c0_i32 = arith.constant 0 : i32
    %c0_i32_0 = arith.constant 0 : i32
    %c0_i32_1 = arith.constant 0 : i32
    return %c0_i32, %c0_i32_0 : i32, i32
  }
  func.func @transform_4(%arg0: i32, %arg1: i32) -> (i32, i32) {
    %c0_i32 = arith.constant 0 : i32
    %c0_i32_0 = arith.constant 0 : i32
    return %arg0, %c0_i32 : i32, i32
  }
}

</mosaic_0001>

<bundles_post_ra>
// kernel: tpu_custom_call.1
= control target key start
LH: loop header
LB: loop body
LE: loop exit
PB: predicated region body
PF: predicated region fallthrough
CT: control target
= control target key end

     0   :  { %9 = vsyncpa [#allocation5], 0  ;;  %s1813_s0 = inlined_call_operand.hbm [shape: f32[16,2,128], index: 0, kind: input, shape index: {}]   ;;  %s1814_s1 = inlined_call_operand.hbm [shape: f32[32,128], index: 1, kind: input, shape index: {}]   ;;  %s1815_s2 = inlined_call_operand.hbm [shape: f32[32,128], index: 2, kind: input, shape index: {}]   ;;  %s1816_s3 = inlined_call_operand.vmem [shape: f32[1,128], index: 3, kind: input, shape index: {}]   ;;  %s1817_s4 = inlined_call_operand.hbm [shape: f32[16,128], index: 4, kind: output, shape index: {}]  }
   0x1   :  { %11 = vsyncpa [#allocation5 + $0x1], 0 }
   0x2   :  { %12 = vsyncpa [#allocation8], 0 }
   0x3   :  { %13 = vsyncpa [#allocation6], 0 }
   0x4   :  { %15 = vsyncpa [#allocation6 + $0x1], 0  ;;  %s1397_s15 = smov 0   ;;  %s1399_s16 = smov 0  }
   0x5   :  { %s1401_s17 = smov 0   ;;  %s1403_s18 = smov 0  }
   0x6   :  { %s1405_s19 = smov 0   ;;  %s1407_s20 = smov 0  }
   0x7 LB: > { %s1021_s21 = sadd.s32 4294967295, %s1354_s20   ;;  %s1022_s22 = sadd.s32 4294967294, %s1354_s20   ;;  %s1354_s20 = sphi %s1407_s20, %s21_s20   ;;  %s1350_s19 = sphi %s1405_s19, %s1839_s19   ;;  %s1346_s18 = sphi %s1403_s18, %s1838_s18   ;;  %s1342_s17 = sphi %s1401_s17, %s1837_s17   ;;  %s1338_s16 = sphi %s1399_s16, %s1836_s16   ;;  %s1334_s15 = sphi %s1397_s15, %s1835_s15  }
   0x8   : > { %p55_p0 = scmp.ne.s32.totalorder %s1338_s16, %s1334_s15  ;;  %p1431_p1 = scmp.eq.s32.totalorder %s1021_s21, 0 }
   0x9   : > { %p1435_p2 = scmp.eq.s32.totalorder %s1021_s21, 1  ;;  %p148_p3 = scmp.eq.s32.totalorder %s1022_s22, 1 }
   0xa   : > { %s1822_s23 = scalar_select %p1431_p1, 1, 0 }
   0xb   : > { %p1441_p4 = por %p1431_p1, %p55_p0  ;;  %p1023_p5 = scmp.ge.s32.totalorder %s1354_s20, 1 }
   0xc   : > { %p1446_p6 = por %p148_p3, %p55_p0  ;;  %p155_p7 = scmp.lt.s32.totalorder %s1354_s20, 3 }
   0xd   : > { %s1824_s25 = scalar_select %p1441_p4, 1, 0 }
   0xe   : > { %s1825_s26 = scalar_select %p1446_p6, 1, 0 }
   0xf   : > { %p1451_p8 = pnand %p1023_p5, %p155_p7  ;;  %s1356_s28 = smov [#allocation7]  }
  0x10   : > { %s167_s29 = sshll.u32 %s1356_s28, 4  ;;  %s1357_s5 = smov [#allocation9]   ;;  %s1455_s29 = int_to_ptr.vmem [resolvable:$true] %s167_s29 }
  0x11   : > { %p1099_p9 = pneg %p1451_p8  ;;  %s180_s6 = sshll.u32 %s1357_s5, 4  ;;  %s1466_s6 = int_to_ptr.vmem [resolvable:$true] %s180_s6 }
  0x12   : > { %s1182_s9 = scalar_lea.hbm %s1814_s1, 512 }
  0x13   : > { %p1462_p11 = pnand %p1099_p9, %p1431_p1  ;;  %p1183_p12 = scmp.ne.s32.totalorder %s1814_s1, %s1182_s9 }
  0x14   : > { %p1189_p5 = scmp.lt.u32.totalorder %s1182_s9, %s1814_s1 }
  0x15   : > { %p1184_p13 = pneg %p1462_p11 }
  0x17   : > { %p1185_p0 = pnand %p1184_p13, %p1183_p12 }
  0x19   : > { %p1186_p3 = pneg %p1185_p0 }
  0x1b   : > { %p1191_p7 = pnand %p1189_p5, %p1186_p3 }
  0x1d   : > { %1194 = shalt.err (!%p1191_p7)
}
  0x1e   : > { %s1195_s14 = scalar_lea.vmem %s1455_s29, 512  ;;  %p1203_p1 = scmp.lt.s32.totalorder %s1455_s29, %s1455_s29 }
  0x1f   : > { %p1196_p9 = scmp.ne.s32.totalorder %s1455_s29, %s1195_s14  ;;  %p1204_p12 = scmp.lt.s32.totalorder %s1195_s14, %s1195_s14 }
  0x21   : > { %p1198_p10 = pnand %p1196_p9, %p1184_p13  ;;  %p1205_p0 = por %p1204_p12, %p1203_p1 }
  0x23   : > { %p1199_p6 = pneg %p1198_p10 }
  0x25   : > { %p1206_p4 = pnand %p1205_p0, %p1199_p6 }
  0x27   : > { %1209 = shalt.err (!%p1206_p4)
}
  0x28   : > { %s1358_s21 = smov 128   ;;  %s1359_s22 = smov 8  }
  0x29   : > { %1102 = dma.hbm_to_vmem [thread:$0]  (!%p1462_p11), %s1814_s1, 512, %s1455_s29, [#allocation8], %s1358_s21, %s1358_s21, %s1359_s22  }
  0x2a   : > { %s1210_s9 = scalar_lea.hbm %s1815_s2, 512 }
  0x2b   : > { %p1211_p1 = scmp.ne.s32.totalorder %s1815_s2, %s1210_s9  ;;  %p1217_p10 = scmp.lt.u32.totalorder %s1210_s9, %s1815_s2 }
  0x2d   : > { %p1213_p4 = pnand %p1211_p1, %p1184_p13 }
  0x2f   : > { %p1214_p6 = pneg %p1213_p4 }
  0x31   : > { %p1219_p3 = pnand %p1217_p10, %p1214_p6 }
  0x33   : > { %1222 = shalt.err (!%p1219_p3)
}
  0x34   : > { %s1223_s29 = scalar_lea.vmem %s1466_s6, 512  ;;  %p1231_p12 = scmp.lt.s32.totalorder %s1466_s6, %s1466_s6 }
  0x35   : > { %p1224_p5 = scmp.ne.s32.totalorder %s1466_s6, %s1223_s29  ;;  %p1232_p0 = scmp.lt.s32.totalorder %s1223_s29, %s1223_s29 }
  0x37   : > { %p1226_p7 = pnand %p1224_p5, %p1184_p13  ;;  %p1233_p1 = por %p1232_p0, %p1231_p12 }
  0x39   : > { %p1227_p9 = pneg %p1226_p7 }
  0x3b   : > { %p1234_p4 = pnand %p1233_p1, %p1227_p9 }
  0x3d   : > { %1237 = shalt.err (!%p1234_p4)
}
  0x3e   : > { %1105 = dma.hbm_to_vmem [thread:$0]  (!%p1462_p11), %s1815_s2, 512, %s1466_s6, [#allocation8], %s1358_s21, %s1358_s21, %s1359_s22  }
  0x3f   : > { %s33_s5 = sadd.s32 1, %s1350_s19  ;;  %s42_s7 = sadd.s32 1, %s1342_s17 }
  0x40   : > { %p35_p13 = scmp.ge.s32.totalorder %s33_s5, 2  ;;  %p49_p6 = scmp.ne.s32.totalorder %s1342_s17, %s1338_s16 }
  0x41   : > { %p50_p10 = scmp.eq.s32.totalorder %s1354_s20, 0  ;;  %p1116_p3 = scmp.lt.s32.totalorder %s1354_s20, 2 }
  0x42   : > { %s1841_s5 = smov (%p35_p13, %s33_s5), 0  ;;  %p1530_p7 = por %p1435_p2, %p49_p6 }
  0x43   : > { %p51_p5 = por %p50_p10, %p49_p6  ;;  %s37_s8 = ssub.s32 %s1350_s19, %s1841_s5 }
  0x44   : > { %s1828_s30 = scalar_select %p1530_p7, 1, 0 }
  0x45   : > { %s197_s9 = sand.u32 1, %s1342_s17   ;;  %p40_p9 = scmp.eq.s32.totalorder %s37_s8, 0 }
  0x46   : > { %s1027_s6 = sshll.u32 %s197_s9, 4  ;;  %s1042_s21 = sshll.u32 %s1350_s19, 8 }
  0x47   : > { %s1539_s22 = scalar_select %p40_p9, %s1342_s17, %s42_s7  }
  0x48   : > { %s1544_s12 = scalar_lea.hbm %s1813_s0, %s1042_s21  ;;  %s201_s24 = scalar_lea.vmem [#allocation4], %s1027_s6 }
  0x49   : > { %s209_s13 = sshll.u32 %s201_s24, 4  ;;  %p1548_p2 = pnand %p1116_p3, %p51_p5  ;;  %s1552_s13 = int_to_ptr.vmem [resolvable:$true] %s209_s13 }
  0x4a   : > { %s1554_s14 = scalar_lea.sflag [#allocation5], %s197_s9  ;;  %s1238_s28 = scalar_lea.hbm %s1544_s12, 256 }
  0x4b   : > { %p1239_p11 = scmp.ne.s32.totalorder %s1544_s12, %s1238_s28  ;;  %p1240_p12 = pneg %p1548_p2 }
  0x4c   : > { %s1243_s6 = scalar_lea.hbm %s1813_s0, 512  ;;  %p1244_p4 = scmp.lt.u32.totalorder %s1544_s12, %s1813_s0 }
  0x4d   : > { %p1241_p0 = pnand %p1240_p12, %p1239_p11  ;;  %p1245_p13 = scmp.lt.u32.totalorder %s1243_s6, %s1238_s28 }
  0x4e   : > { %p1247_p10 = scmp.lt.u32.totalorder %s1238_s28, %s1544_s12 }
  0x4f   : > { %p1242_p1 = pneg %p1241_p0  ;;  %p1246_p6 = por %p1245_p13, %p1244_p4 }
  0x51   : > { %p1248_p3 = por %p1247_p10, %p1246_p6 }
  0x53   : > { %p1249_p5 = pnand %p1248_p3, %p1242_p1 }
  0x55   : > { %1252 = shalt.err (!%p1249_p5)
}
  0x56   : > { %s1253_s9 = scalar_lea.vmem %s1552_s13, 256  ;;  %s1360_s11 = smov [#allocation4]  }
  0x57   : > { %p1254_p9 = scmp.ne.s32.totalorder %s1552_s13, %s1253_s9  ;;  %s1258_s24 = sshll.u32 %s1360_s11, 4  ;;  %s1259_s24 = int_to_ptr.vmem [resolvable:$false] %s1258_s24 }
  0x58   : > { %s1260_s7 = scalar_lea.vmem %s1259_s24, 512  ;;  %p1261_p7 = scmp.lt.s32.totalorder %s1552_s13, %s1259_s24 }
  0x59   : > { %p1256_p11 = pnand %p1254_p9, %p1240_p12  ;;  %p1262_p4 = scmp.lt.s32.totalorder %s1260_s7, %s1253_s9 }
  0x5b   : > { %p1257_p0 = pneg %p1256_p11  ;;  %p1263_p13 = por %p1262_p4, %p1261_p7 }
  0x5d   : > { %p1264_p6 = pnand %p1263_p13, %p1257_p0 }
  0x5f   : > { %1267 = shalt.err (!%p1264_p6)
}
  0x60   : > { %s1361_s28 = smov 32   ;;  %s1362_s8 = smov 2  }
  0x61   : > { %1109 = dma.hbm_to_vmem [thread:$0]  (!%p1548_p2), %s1544_s12, 256, %s1552_s13, %s1554_s14, %s1361_s28, %s1361_s28, %s1362_s8  }
  0x62   : > { %221 = sbr.rel (%p1451_p8) target bundleno = 535 (0x217), region = 36  ;;  %s1585_s6 = sand.u32 (!%p1451_p8), 1, %s1338_s16  }
  0x63   : > { %s1031_s21 = sshll.u32 (!%p1451_p8), %s1585_s6, 4  ;;  %s224_s10 = scalar_lea.sflag (!%p1451_p8), [#allocation5], %s1585_s6 }
  0x64   : > { %s227_s9 = scalar_lea.vmem (!%p1451_p8), [#allocation4], %s1031_s21  ;;  %p1830_p7 = scmp.ne.s32.totalorder (!%p1451_p8), %s1824_s25, 0 }
  0x69   : > { %1321 = dma.done.wait (%p1830_p7), %s224_s10, 256  }
  0x6a   : > { %1323 = vsyncadd (%p1830_p7), %s224_s10, 4294967040  ;;  %p1831_p12 = scmp.ne.s32.totalorder %s1822_s23, 0 }
  0x6c   : > { %1325 = dma.done.wait (%p1831_p12), [#allocation8], 1024  }
  0x6d   : > { %1327 = vsyncadd (%p1831_p12), [#allocation8], 4294966272  ;;  %vm276_vm0 = vcmask 1041408   ;;  %v1597_v0 = vld [vmem:[%s227_s9] sm:$0x3]  ;;  %vm341_vm1 = vcmask 1041409  }
  0x6e   : > { %v1599_v1 = vld [vmem:[%s227_s9 + $0x2] sm:$0x3]  ;;  %v1601_v2 = vld [vmem:[%s227_s9 + $0x4] sm:$0x3]  ;;  %v1603_v3 = vld [vmem:[%s227_s9 + $0x6] sm:$0x3] }
  0x6f   : > { %v1605_v4 = vld [vmem:[%s227_s9 + $0x8] sm:$0x3]  ;;  %v1607_v5 = vld [vmem:[%s227_s9 + $0xa] sm:$0x3]  ;;  %v1609_v6 = vld [vmem:[%s227_s9 + $0xc] sm:$0x3] }
  0x70   : > { %v359_v7 = vsel %vm276_vm0, %v1597_v0, 0.0  ;;  %v366_v8 = vsel %vm276_vm0, %v1599_v1, 0.0  ;;  %v1615_v9 = vld [vmem:[%s227_s9 + $0xe] sm:$0x3]  ;;  %v373_v12 = vsel %vm276_vm0, %v1601_v2, 0.0  ;;  %v380_v13 = vsel %vm276_vm0, %v1603_v3, 0.0 }
  0x71   : > { %v360_v10 = vrot.slane %v359_v7, 4  ;;  %v367_v11 = vrot.slane %v366_v8, 4  ;;  %v374_v14 = vrot.slane %v373_v12, 4  ;;  %v381_v15 = vrot.slane %v380_v13, 4  ;;  %s1363_s23 = smov 32   ;;  %s1364_s25 = smov 96  }
  0x72   : > { %v387_v16 = vsel %vm276_vm0, %v1605_v4, 0.0  ;;  %v394_v17 = vsel %vm276_vm0, %v1607_v5, 0.0  ;;  %vm343_vm2 = vcmask 1042434   ;;  %vm345_vm3 = vcmask 1043459   ;;  %s1365_s27 = smov 64   ;;  %s1034_s12 = sshll.u32 %s1585_s6, 3 }
  0x73   : > { %v361_v18 = vadd.f32 %v360_v10, %v359_v7  ;;  %v368_v19 = vadd.f32 %v367_v11, %v366_v8  ;;  %v388_v20 = vrot.slane %v387_v16, 4  ;;  %v395_v21 = vrot.slane %v394_v17, 4  ;;  %s1039_s14 = sshll.u32 %s1346_s18, 7  ;;  %s259_s11 = scalar_lea.vmem [#allocation10], %s1034_s12 }
  0x74   : > { %v375_v22 = vadd.f32 %v374_v14, %v373_v12  ;;  %v382_v23 = vadd.f32 %v381_v15, %v380_v13  ;;  %v401_v24 = vsel %vm276_vm0, %v1609_v6, 0.0  ;;  %v408_v25 = vsel %vm276_vm0, %v1615_v9, 0.0  ;;  %s922_s24 = sshll.u32 %s259_s11, 4  ;;  %s1764_s8 = scalar_lea.hbm %s1817_s4, %s1039_s14  ;;  %s1766_s24 = int_to_ptr.vmem [resolvable:$true] %s922_s24 }
  0x75   : > { %vm347_vm4 = vcmask 1044484   ;;  %v362_v26 = vrot.slane %v361_v18, 2  ;;  %v369_v27 = vrot.slane %v368_v19, 2  ;;  %v389_v28 = vadd.f32 %v388_v20, %v387_v16  ;;  %s909_s21 = scalar_lea.sflag [#allocation6], %s1585_s6  ;;  %s1268_s10 = scalar_lea.vmem %s1766_s24, 128 }
  0x76   : > { %v396_v29 = vadd.f32 %v395_v21, %v394_v17  ;;  %vm349_vm5 = vcmask 1045509   ;;  %v376_v30 = vrot.slane %v375_v22, 2  ;;  %v383_v31 = vrot.slane %v382_v23, 2  ;;  %p1269_p8 = scmp.ne.s32.totalorder %s1766_s24, %s1268_s10  ;;  %p1832_p2 = scmp.ne.s32.totalorder %s1828_s30, 0 }
  0x77   : > { %v402_v32 = vrot.slane %v401_v24, 4  ;;  %v409_v33 = vrot.slane %v408_v25, 4  ;;  %vm351_vm6 = vcmask 1046534   ;;  %v363_v34 = vadd.f32 %v362_v26, %v361_v18  ;;  %s1371_s18 = smov [#allocation10]  }
  0x78   : > { %v370_v35 = vadd.f32 %v369_v27, %v368_v19  ;;  %v390_v36 = vrot.slane %v389_v28, 2  ;;  %v397_v37 = vrot.slane %v396_v29, 2  ;;  %vm353_vm7 = vcmask 1047559   ;;  %p1270_p1 = pnand %p1269_p8, %p1832_p2  ;;  %s1272_s9 = sshll.u32 %s1371_s18, 4  ;;  %s1273_s9 = int_to_ptr.vmem [resolvable:$false] %s1272_s9 }
  0x79   : > { %v377_v38 = vadd.f32 %v376_v30, %v375_v22  ;;  %v384_v39 = vadd.f32 %v383_v31, %v382_v23  ;;  %v403_v40 = vadd.f32 %v402_v32, %v401_v24  ;;  %v410_v41 = vadd.f32 %v409_v33, %v408_v25  ;;  %p1275_p3 = scmp.lt.s32.totalorder %s1766_s24, %s1273_s9 }
  0x7a   : > { %v364_v42 = vrot.slane %v363_v34, 1  ;;  %v371_v43 = vrot.slane %v370_v35, 1  ;;  %v391_v44 = vadd.f32 %v390_v36, %v389_v28  ;;  %v398_v45 = vadd.f32 %v397_v37, %v396_v29  ;;  %p1271_p10 = pneg %p1270_p1 }
  0x7b   : > { %v378_v46 = vrot.slane %v377_v38, 1  ;;  %v385_v47 = vrot.slane %v384_v39, 1  ;;  %v404_v48 = vrot.slane %v403_v40, 2  ;;  %v411_v49 = vrot.slane %v410_v41, 2 }
  0x7c   : > { %v365_v50 = vadd.f32 %v364_v42, %v363_v34  ;;  %v372_v51 = vadd.f32 %v371_v43, %v370_v35  ;;  %v392_v52 = vrot.slane %v391_v44, 1  ;;  %v399_v53 = vrot.slane %v398_v45, 1 }
  0x7d   : > { %v379_v54 = vadd.f32 %v378_v46, %v377_v38  ;;  %v386_v55 = vadd.f32 %v385_v47, %v384_v39  ;;  %v405_v56 = vadd.f32 %v404_v48, %v403_v40  ;;  %v412_v57 = vadd.f32 %v411_v49, %v410_v41 }
  0x7e   : > { %v393_v58 = vadd.f32 %v392_v52, %v391_v44  ;;  %v400_v59 = vadd.f32 %v399_v53, %v398_v45  ;;  %v423_v60 = vsel %vm341_vm1, %v372_v51, %v365_v50  ;;  %v277_v61 = vsel %vm276_vm0, %v1597_v0, -inf }
  0x7f   : > { %v406_v62 = vrot.slane %v405_v56, 1  ;;  %v413_v63 = vrot.slane %v412_v57, 1  ;;  %v424_v7 = vsel %vm343_vm2, %v379_v54, %v423_v60  ;;  %v278_v8 = vrot.slane %v277_v61, 4 }
  0x80   : > { %v425_v10 = vsel %vm345_vm3, %v386_v55, %v424_v7  ;;  %v284_v11 = vsel %vm276_vm0, %v1599_v1, -inf  ;;  %v291_v12 = vsel %vm276_vm0, %v1601_v2, -inf  ;;  %v298_v13 = vsel %vm276_vm0, %v1603_v3, -inf }
  0x81   : > { %v407_v14 = vadd.f32 %v406_v62, %v405_v56  ;;  %v414_v15 = vadd.f32 %v413_v63, %v412_v57  ;;  %v426_v0 = vsel %vm347_vm4, %v393_v58, %v425_v10  ;;  %v279_v16 = vmax.f32 %v277_v61, %v278_v8 }
  0x82   : > { %v427_v17 = vsel %vm349_vm5, %v400_v59, %v426_v0  ;;  %v285_v18 = vrot.slane %v284_v11, 4  ;;  %v292_v19 = vrot.slane %v291_v12, 4  ;;  %v299_v20 = vrot.slane %v298_v13, 4 }
  0x83   : > { %v428_v21 = vsel %vm351_vm6, %v407_v14, %v427_v17  ;;  %v280_v22 = vrot.slane %v279_v16, 2  ;;  %v305_v1 = vsel %vm276_vm0, %v1605_v4, -inf  ;;  %v312_v2 = vsel %vm276_vm0, %v1607_v5, -inf  ;;  %v719_v14 = vld [vmem:[#allocation9] sm:$0xff]  ;;  %v716_v17 = vld [vmem:[#allocation7 + $0x8] sm:$0xff] }
  0x84   : > { %v1648_v3 = vsel %vm353_vm7, %v414_v15, %v428_v21  ;;  %v286_v23 = vmax.f32 %v284_v11, %v285_v18  ;;  %v293_v24 = vmax.f32 %v291_v12, %v292_v19  ;;  %v300_v25 = vmax.f32 %v298_v13, %v299_v20  ;;  %v720_v15 = vld [vmem:[#allocation9 + $0x8] sm:$0xff]  ;;  %v721_v18 = vld [vmem:[#allocation9 + $0x10] sm:$0xff]  ;;  %v722_v21 = vld [vmem:[#allocation9 + $0x18] sm:$0xff] }
  0x85   : > { %580 = vrot.lane.b32.xlu1 %v1648_v3, %s1363_s23  ;;  %574 = vrot.lane.b32.xlu0 %v1648_v3, %s1364_s25  ;;  %v281_v26 = vmax.f32 %v279_v16, %v280_v22  ;;  %v306_v27 = vrot.slane %v305_v1, 4  ;;  %v313_v4 = vrot.slane %v312_v2, 4  ;;  %v319_v5 = vsel %vm276_vm0, %v1609_v6, -inf  ;;  %v715_v16 = vld [vmem:[#allocation7] sm:$0xff]  ;;  %v717_v22 = vld [vmem:[#allocation7 + $0x10] sm:$0xff] }
  0x86   : > { %v287_v28 = vrot.slane %v286_v23, 2  ;;  %v294_v29 = vrot.slane %v293_v24, 2  ;;  %v301_v30 = vrot.slane %v300_v25, 2  ;;  %v320_v31 = vrot.slane %v319_v5, 4 }
  0x87   : > { %v282_v32 = vrot.slane %v281_v26, 1  ;;  %v307_v33 = vmax.f32 %v305_v1, %v306_v27  ;;  %v314_v34 = vmax.f32 %v312_v2, %v313_v4  ;;  %v326_v35 = vsel %vm276_vm0, %v1615_v9, -inf  ;;  %v718_v1 = vld [vmem:[#allocation7 + $0x18] sm:$0xff] }
  0x88   : > { %v288_v36 = vmax.f32 %v286_v23, %v287_v28  ;;  %v295_v37 = vmax.f32 %v293_v24, %v294_v29  ;;  %v302_v38 = vmax.f32 %v300_v25, %v301_v30  ;;  %v321_v39 = vmax.f32 %v319_v5, %v320_v31 }
  0x89   : > { %577 = vrot.lane.b32.xlu0 %v1648_v3, %s1365_s27  ;;  %v283_v40 = vmax.f32 %v281_v26, %v282_v32  ;;  %v308_v6 = vrot.slane %v307_v33, 2  ;;  %v315_v41 = vrot.slane %v314_v34, 2  ;;  %v327_v42 = vrot.slane %v326_v35, 4 }
  0x8a   : > { %v289_v43 = vrot.slane %v288_v36, 1  ;;  %v296_v44 = vrot.slane %v295_v37, 1  ;;  %v303_v45 = vrot.slane %v302_v38, 1  ;;  %v322_v46 = vrot.slane %v321_v39, 2 }
  0x8b   : > { %v309_v47 = vmax.f32 %v307_v33, %v308_v6  ;;  %v316_v48 = vmax.f32 %v314_v34, %v315_v41  ;;  %v328_v49 = vmax.f32 %v326_v35, %v327_v42  ;;  %v1076_v0 = vpack.c.bf16 %v720_v15, %v719_v14 }
  0x8c   : > { %v290_v9 = vmax.f32 %v288_v36, %v289_v43  ;;  %v297_v50 = vmax.f32 %v295_v37, %v296_v44  ;;  %v304_v51 = vmax.f32 %v302_v38, %v303_v45  ;;  %v323_v52 = vmax.f32 %v321_v39, %v322_v46 }
  0x8d   : > { %v310_v53 = vrot.slane %v309_v47, 1  ;;  %v317_v54 = vrot.slane %v316_v48, 1  ;;  %v329_v55 = vrot.slane %v328_v49, 2  ;;  %v1366_v19 = vmov 0.0|0.0  }
  0x8e   : > { %v324_v56 = vrot.slane %v323_v52, 1  ;;  %v342_v57 = vsel %vm341_vm1, %v290_v9, %v283_v40  ;;  %1075 = vmatprep.subr.bf16.mxu0 %v1366_v19  ;;  %1081 = vmatprep.subr.bf16.mxu1 %v1366_v19  ;;  %v1082_v20 = vpack.c.bf16 %v716_v17, %v715_v16  ;;  %v1079_v2 = vpack.c.bf16 %v722_v21, %v721_v18 }
  0x8f   : > { %v311_v58 = vmax.f32 %v309_v47, %v310_v53  ;;  %v318_v59 = vmax.f32 %v316_v48, %v317_v54  ;;  %v330_v60 = vmax.f32 %v328_v49, %v329_v55  ;;  %v344_v61 = vsel %vm343_vm2, %v297_v50, %v342_v57  ;;  %1077 = vmatpush3.bf16.msra.mxu0 %v1076_v0 }
  0x90   : > { %v325_v62 = vmax.f32 %v323_v52, %v324_v56  ;;  %v346_v63 = vsel %vm345_vm3, %v304_v51, %v344_v61  ;;  %vm1367_vm8 = vmmov 0   ;;  %v1368_v23 = vmov 0.0   ;;  %1083 = vmatpush3.bf16.msra.mxu1 %v1082_v20  ;;  %1078 = vmatprep.subr.bf16.mxu0 %v1366_v19 }
  0x91   : > { %v331_v7 = vrot.slane %v330_v60, 1  ;;  %v348_v8 = vsel %vm347_vm4, %v311_v58, %v346_v63  ;;  %1061 = vmatprep.mubr.msk.f32.mxu0 %vm1367_vm8, %v1368_v23  ;;  %v1085_v24 = vpack.c.bf16 %v718_v1, %v717_v22  ;;  %1084 = vmatprep.subr.bf16.mxu1 %v1366_v19  ;;  %v1369_v25 = vmov 1983009808  }
  0x92   : > { %v350_v10 = vsel %vm349_vm5, %v318_v59, %v348_v8  ;;  %1072 = vmatprep.mubr.msk.f32.mxu1 %vm1367_vm8, %v1368_v23  ;;  %v451_v26 = vunpack.c.l.s4 %v1369_v25  ;;  %v453_v27 = vlaneseq  ;;  %v1370_v4 = vmov 1934713408  }
  0x93   : > { %v332_v11 = vmax.f32 %v330_v60, %v331_v7  ;;  %v352_v12 = vsel %vm351_vm6, %v325_v62, %v350_v10  ;;  %1080 = vmatpush3.bf16.msra.mxu0 %v1079_v2  ;;  %v483_v5 = vunpack.c.l.s4 %v1370_v4  ;;  %vm516_vm9 = vcmask 257024  }
  0x94   : > { %1086 = vmatpush3.bf16.msra.mxu1 %v1085_v24  ;;  %v452_v28 = vunpack.c.0.s8 %v451_v26  ;;  %v454_v29 = vshrl.u32 %v453_v27, 7  ;;  %vm738_vm10 = vcmask 261120  }
  0x95   : > { %v1667_v13 = vsel %vm353_vm7, %v332_v11, %v352_v12  ;;  %v484_v32 = vunpack.c.0.s8 %v483_v5 }
  0x96   : > { %439 = vrot.lane.b32.xlu1 %v1667_v13, %s1364_s25  ;;  %442 = vrot.lane.b32.xlu0 %v1667_v13, %s1365_s27  ;;  %v1677_v33 = vsub.s32 %v452_v28, %v454_v29 }
  0x97   : > { %v1681_v39 = vsub.s32 %v484_v32, %v454_v29 }
  0x9a   : > { %445 = vrot.lane.b32.xlu1 %v1667_v13, %s1363_s23  ;;  %s1274_s23 = scalar_lea.vmem %s1273_s9, 256 }
  0x9b   : > { %p1276_p5 = scmp.lt.s32.totalorder %s1274_s23, %s1268_s10 }
  0x9d   : > { %p1277_p9 = por %p1276_p5, %p1275_p3 }
  0x9f   : > { %p1278_p11 = pnand %p1277_p9, %p1271_p10 }
  0xf7   : > { %v581_v30 = vpop.permute.xlu1 %580  ;;  %v575_v31 = vpop.permute.xlu0 %574 }
  0xf8   : > { %v599_v34 = vcombine.low %v575_v31, %v581_v30  ;;  %v600_v35 = vcombine.high %v575_v31, %v581_v30 }
  0xfa   : > { %v607_v40 = vrot.slane %v599_v34, %v1677_v33  ;;  %v614_v6 = vrot.slane %v600_v35, %v1677_v33 }
  0xfb   : > { %v578_v36 = vpop.permute.xlu0 %577 }
  0xfc   : > { %v583_v37 = vcombine.low %v1648_v3, %v578_v36  ;;  %v584_v38 = vcombine.high %v1648_v3, %v578_v36 }
  0xfe   : > { %v591_v41 = vrot.slane %v583_v37, %v1677_v33  ;;  %v598_v42 = vrot.slane %v584_v38, %v1677_v33 }
 0x100   : > { %v615_v43 = vcombine.low %v591_v41, %v607_v40  ;;  %v616_v44 = vcombine.high %v591_v41, %v607_v40  ;;  %v631_v45 = vcombine.low %v598_v42, %v614_v6  ;;  %v632_v46 = vcombine.high %v598_v42, %v614_v6 }
 0x102   : > { %v623_v47 = vrot.slane %v615_v43, %v1681_v39  ;;  %v630_v48 = vrot.slane %v616_v44, %v1681_v39  ;;  %v639_v3 = vrot.slane %v631_v45, %v1681_v39  ;;  %v646_v49 = vrot.slane %v632_v46, %v1681_v39 }
 0x104   : > { %v647_v9 = vcombine.high %v623_v47, %v1368_v23  ;;  %v648_v50 = vcombine.high %v630_v48, %v1368_v23  ;;  %v649_v51 = vcombine.high %v639_v3, %v1368_v23  ;;  %v650_v52 = vcombine.high %v646_v49, %v1368_v23 }
 0x105   : > { %v651_v53 = vsel %vm516_vm9, %v623_v47, 0.0  ;;  %v665_v54 = vsel %vm516_vm9, %v630_v48, 0.0  ;;  %v679_v55 = vsel %vm516_vm9, %v639_v3, 0.0  ;;  %v693_v56 = vsel %vm516_vm9, %v646_v49, 0.0 }
 0x106   : > { %v652_v57 = vrot.slane %v651_v53, 4  ;;  %v658_v58 = vsel %vm516_vm9, %v647_v9, 0.0  ;;  %v666_v59 = vrot.slane %v665_v54, 4  ;;  %v672_v60 = vsel %vm516_vm9, %v648_v50, 0.0 }
 0x107   : > { %v659_v61 = vrot.slane %v658_v58, 4  ;;  %v673_v62 = vrot.slane %v672_v60, 4  ;;  %v680_v63 = vrot.slane %v679_v55, 4  ;;  %v686_v7 = vsel %vm516_vm9, %v649_v51, 0.0 }
 0x108   : > { %v653_v8 = vadd.f32 %v652_v57, %v651_v53  ;;  %v667_v10 = vadd.f32 %v666_v59, %v665_v54  ;;  %v687_v11 = vrot.slane %v686_v7, 4  ;;  %v694_v12 = vrot.slane %v693_v56, 4  ;;  %v440_v14 = vpop.permute.xlu1 %439  ;;  %v443_v21 = vpop.permute.xlu0 %442 }
 0x109   : > { %v660_v15 = vadd.f32 %v659_v61, %v658_v58  ;;  %v674_v0 = vadd.f32 %v673_v62, %v672_v60  ;;  %v681_v16 = vadd.f32 %v680_v63, %v679_v55  ;;  %v700_v17 = vsel %vm516_vm9, %v650_v52, 0.0 }
 0x10a   : > { %v654_v18 = vrot.slane %v653_v8, 2  ;;  %v668_v19 = vrot.slane %v667_v10, 2  ;;  %v688_v20 = vadd.f32 %v687_v11, %v686_v7  ;;  %v695_v24 = vadd.f32 %v694_v12, %v693_v56 }
 0x10b   : > { %v661_v22 = vrot.slane %v660_v15, 2  ;;  %v675_v1 = vrot.slane %v674_v0, 2  ;;  %v682_v2 = vrot.slane %v681_v16, 2  ;;  %v701_v4 = vrot.slane %v700_v17, 4 }
 0x10c   : > { %v655_v25 = vadd.f32 %v654_v18, %v653_v8  ;;  %v669_v26 = vadd.f32 %v668_v19, %v667_v10  ;;  %v689_v27 = vrot.slane %v688_v20, 2  ;;  %v448_v30 = vcombine.low %v1667_v13, %v443_v21  ;;  %v446_v31 = vpop.permute.xlu1 %445 }
 0x10d   : > { %v662_v5 = vadd.f32 %v661_v22, %v660_v15  ;;  %v676_v28 = vadd.f32 %v675_v1, %v674_v0  ;;  %v683_v29 = vadd.f32 %v682_v2, %v681_v16  ;;  %v449_v36 = vcombine.high %v1667_v13, %v443_v21 }
 0x10e   : > { %v656_v32 = vrot.slane %v655_v25, 1  ;;  %v670_v34 = vrot.slane %v669_v26, 1  ;;  %v690_v35 = vadd.f32 %v689_v27, %v688_v20  ;;  %v696_v6 = vrot.slane %v695_v24, 2 }
 0x10f   : > { %v663_v37 = vrot.slane %v662_v5, 1  ;;  %v677_v38 = vrot.slane %v676_v28, 1  ;;  %v684_v40 = vrot.slane %v683_v29, 1  ;;  %v456_v43 = vrot.slane %v448_v30, %v1677_v33 }
 0x110   : > { %v657_v41 = vadd.f32 %v656_v32, %v655_v25  ;;  %v671_v42 = vadd.f32 %v670_v34, %v669_v26  ;;  %v464_v44 = vcombine.low %v440_v14, %v446_v31  ;;  %v463_v46 = vrot.slane %v449_v36, %v1677_v33 }
 0x111   : > { %v664_v45 = vadd.f32 %v663_v37, %v662_v5  ;;  %v465_v47 = vcombine.high %v440_v14, %v446_v31  ;;  %v678_v48 = vadd.f32 %v677_v38, %v676_v28  ;;  %v691_v49 = vrot.slane %v690_v35, 1 }
 0x112   : > { %v472_v3 = vrot.slane %v464_v44, %v1677_v33  ;;  %v1708_v9 = vadd.f32 %v684_v40, %v683_v29  ;;  %v697_v50 = vadd.f32 %v696_v6, %v695_v24  ;;  %v702_v51 = vadd.f32 %v701_v4, %v700_v17 }
 0x113   : > { %v479_v13 = vrot.slane %v465_v47, %v1677_v33  ;;  %v1711_v52 = vmul.f32 0.125, %v657_v41  ;;  %v1713_v53 = vmul.f32 0.125, %v671_v42  ;;  %v1715_v56 = vmul.f32 0.125, %v664_v45 }
 0x114   : > { %v480_v54 = vcombine.low %v456_v43, %v472_v3  ;;  %v481_v55 = vcombine.high %v456_v43, %v472_v3  ;;  %v703_v59 = vrot.slane %v702_v51, 2  ;;  %v692_v62 = vadd.f32 %v691_v49, %v690_v35 }
 0x115   : > { %v496_v57 = vcombine.low %v463_v46, %v479_v13  ;;  %v497_v58 = vcombine.high %v463_v46, %v479_v13  ;;  %v1719_v63 = vmul.f32 0.125, %v678_v48  ;;  %v698_v8 = vrot.slane %v697_v50, 1 }
 0x116   : > { %v488_v60 = vrot.slane %v480_v54, %v1681_v39  ;;  %v495_v61 = vrot.slane %v481_v55, %v1681_v39  ;;  %v704_v10 = vadd.f32 %v703_v59, %v702_v51  ;;  %v711_v55 = vmul.f32 0.125, %v1708_v9 }
 0x117   : > { %v504_v33 = vrot.slane %v496_v57, %v1681_v39  ;;  %v511_v7 = vrot.slane %v497_v58, %v1681_v39  ;;  %v699_v42 = vadd.f32 %v698_v8, %v697_v50 }
 0x118   : > { %v512_v11 = vcombine.high %v488_v60, %v1368_v23  ;;  %v513_v12 = vcombine.high %v495_v61, %v1368_v23  ;;  %v517_v14 = vsel %vm516_vm9, %v488_v60, -inf  ;;  %v531_v15 = vsel %vm516_vm9, %v495_v61, -inf }
 0x119   : > { %v514_v0 = vcombine.high %v504_v33, %v1368_v23  ;;  %v515_v16 = vcombine.high %v511_v7, %v1368_v23  ;;  %v518_v17 = vrot.slane %v517_v14, 4  ;;  %v532_v18 = vrot.slane %v531_v15, 4 }
 0x11a   : > { %v524_v19 = vsel %vm516_vm9, %v512_v11, -inf  ;;  %v538_v39 = vsel %vm516_vm9, %v513_v12, -inf  ;;  %v545_v20 = vsel %vm516_vm9, %v504_v33, -inf  ;;  %v559_v21 = vsel %vm516_vm9, %v511_v7, -inf }
 0x11b   : > { %v519_v22 = vmax.f32 %v517_v14, %v518_v17  ;;  %v525_v1 = vrot.slane %v524_v19, 4  ;;  %v533_v2 = vmax.f32 %v531_v15, %v532_v18  ;;  %v539_v24 = vrot.slane %v538_v39, 4 }
 0x11c   : > { %v546_v25 = vrot.slane %v545_v20, 4  ;;  %v552_v26 = vsel %vm516_vm9, %v514_v0, -inf  ;;  %v560_v27 = vrot.slane %v559_v21, 4  ;;  %v566_v23 = vsel %vm516_vm9, %v515_v16, -inf }
 0x11d   : > { %v520_v4 = vrot.slane %v519_v22, 2  ;;  %v526_v5 = vmax.f32 %v524_v19, %v525_v1  ;;  %v534_v28 = vrot.slane %v533_v2, 2  ;;  %v540_v29 = vmax.f32 %v538_v39, %v539_v24 }
 0x11e   : > { %v547_v30 = vmax.f32 %v545_v20, %v546_v25  ;;  %v553_v31 = vrot.slane %v552_v26, 4  ;;  %v561_v32 = vmax.f32 %v559_v21, %v560_v27  ;;  %v567_v34 = vrot.slane %v566_v23, 4 }
 0x11f   : > { %v521_v35 = vmax.f32 %v519_v22, %v520_v4  ;;  %v527_v36 = vrot.slane %v526_v5, 2  ;;  %v535_v37 = vmax.f32 %v533_v2, %v534_v28  ;;  %v541_v38 = vrot.slane %v540_v29, 2  ;;  %v1037_v4 = vld [vmem:[%s1816_s3] ss:$0 sm:$0xff] }
 0x120   : > { %v548_v40 = vrot.slane %v547_v30, 2  ;;  %v554_v6 = vmax.f32 %v552_v26, %v553_v31  ;;  %v562_v41 = vrot.slane %v561_v32, 2  ;;  %v705_v49 = vrot.slane %v704_v10, 1 }
 0x121   : > { %v522_v43 = vrot.slane %v521_v35, 1  ;;  %v528_v44 = vmax.f32 %v526_v5, %v527_v36  ;;  %v536_v45 = vrot.slane %v535_v37, 1  ;;  %v542_v46 = vmax.f32 %v540_v29, %v541_v38 }
 0x122   : > { %v549_v47 = vmax.f32 %v547_v30, %v548_v40  ;;  %v555_v48 = vrot.slane %v554_v6, 2  ;;  %v563_v3 = vmax.f32 %v561_v32, %v562_v41  ;;  %v568_v54 = vmax.f32 %v566_v23, %v567_v34 }
 0x123   : > { %v529_v13 = vrot.slane %v528_v44, 1  ;;  %v543_v51 = vrot.slane %v542_v46, 1  ;;  %v706_v59 = vadd.f32 %v705_v49, %v704_v10  ;;  %v712_v60 = vmul.f32 0.125, %v692_v62 }
 0x124   : > { %v550_v57 = vrot.slane %v549_v47, 1  ;;  %v556_v58 = vmax.f32 %v554_v6, %v555_v48  ;;  %v523_v61 = vmax.f32 %v521_v35, %v522_v43  ;;  %v537_v33 = vmax.f32 %v535_v37, %v536_v45 }
 0x125   : > { %v530_v50 = vmax.f32 %v528_v44, %v529_v13  ;;  %v731_v7 = vsel %vm341_vm1, %v1715_v56, %v1711_v52  ;;  %v713_v8 = vmul.f32 0.125, %v699_v42  ;;  %v564_v14 = vrot.slane %v563_v3, 1 }
 0x126   : > { %v732_v11 = vsel %vm343_vm2, %v1713_v53, %v731_v7  ;;  %v557_v12 = vrot.slane %v556_v58, 1  ;;  %v544_v15 = vmax.f32 %v542_v46, %v543_v51  ;;  %v569_v0 = vrot.slane %v568_v54, 2 }
 0x127   : > { %v733_v9 = vsel %vm345_vm3, %v1719_v63, %v732_v11  ;;  %v819_v62 = vsel %vm341_vm1, %v530_v50, %v523_v61  ;;  %v551_v10 = vmax.f32 %v549_v47, %v550_v57  ;;  %v714_v16 = vmul.f32 0.125, %v706_v59 }
 0x128   : > { %v734_v17 = vsel %vm347_vm4, %v711_v55, %v733_v9  ;;  %v820_v18 = vsel %vm343_vm2, %v537_v33, %v819_v62  ;;  %v558_v56 = vmax.f32 %v556_v58, %v557_v12  ;;  %v570_v53 = vmax.f32 %v568_v54, %v569_v0 }
 0x129   : > { %v735_v52 = vsel %vm349_vm5, %v712_v60, %v734_v17  ;;  %v821_v19 = vsel %vm345_vm3, %v544_v15, %v820_v18  ;;  %v565_v20 = vmax.f32 %v563_v3, %v564_v14 }
 0x12a   : > { %v736_v39 = vsel %vm351_vm6, %v713_v8, %v735_v52  ;;  %v822_v63 = vsel %vm347_vm4, %v551_v10, %v821_v19  ;;  %v571_v22 = vrot.slane %v570_v53, 1 }
 0x12b   : > { %v737_v21 = vsel %vm353_vm7, %v714_v16, %v736_v39  ;;  %v823_v1 = vsel %vm349_vm5, %v558_v56, %v822_v63 }
 0x12c   : > { %1062 = vmatmul.mubr.msk.f32.vlgmr.msra.gmra.mrb[0].mxu0 %vm738_vm10, %v737_v21  ;;  %v824_v2 = vsel %vm351_vm6, %v565_v20, %v823_v1  ;;  %v572_v24 = vmax.f32 %v570_v53, %v571_v22 }
 0x12e   : > { %v825_v25 = vsel %vm353_vm7, %v572_v24, %v824_v2 }
 0x12f   : > { %1073 = vmatmul.mubr.msk.f32.vlgmr.msra.gmra.mrb[0].mxu1 %vm738_vm10, %v825_v25 }
 0x1ff   : > { %v807_v26 = vpop.f32.mrb[0].mxu0 }
 0x200   : > { %v1063_v27 = vpop.f32.mrb[1].mxu0 }
 0x202   : > { %v894_v23 = vpop.f32.mrb[0].mxu1 }
 0x203   : > { %v895_v5 = vadd.f32 %v894_v23, %v807_v26  ;;  %v1074_v28 = vpop.f32.mrb[1].mxu1 }
 0x205   : > { %v905_v29 = vadd.f32 %v1037_v4, %v895_v5 }
 0x207   : > { %v906_v30 = vmax.f32 %v905_v29, 0.0 }
 0x209   : > { %907 = vst [vmem:[%s259_s11] sm:$0xff] %v906_v30 }
 0x20a   : > { %1281 = shalt.err (!%p1278_p11)
}
 0x20b   : > { %s1282_s6 = scalar_lea.hbm %s1764_s8, 128  ;;  %s1286_s12 = scalar_lea.hbm %s1817_s4, 256 }
 0x20c   : > { %p1283_p0 = scmp.ne.s32.totalorder %s1764_s8, %s1282_s6  ;;  %p1287_p6 = scmp.lt.u32.totalorder %s1764_s8, %s1817_s4 }
 0x20d   : > { %p1288_p7 = scmp.lt.u32.totalorder %s1286_s12, %s1282_s6  ;;  %p1290_p8 = scmp.lt.u32.totalorder %s1282_s6, %s1764_s8 }
 0x20e   : > { %p1284_p4 = pnand %p1283_p0, %p1832_p2 }
 0x20f   : > { %p1289_p12 = por %p1288_p7, %p1287_p6 }
 0x210   : > { %p1285_p13 = pneg %p1284_p4 }
 0x211   : > { %p1291_p1 = por %p1290_p8, %p1289_p12 }
 0x213   : > { %p1292_p10 = pnand %p1291_p1, %p1285_p13 }
 0x215   : > { %1295 = shalt.err (!%p1292_p10)
}
 0x216   : > { %1097 = dma.vmem_to_hbm [thread:$0]  (%p1832_p2), %s1766_s24, 128, %s1764_s8, %s909_s21  }
 0x217 PF: > { %s934_s14 = sand.u32 1, %s1334_s15   ;;  %p1833_p3 = scmp.ne.s32.totalorder %s1825_s26, 0 }
 0x218   : > { %p1834_p5 = scmp.ge.s32.totalorder %s1354_s20, 2  ;;  %s935_s11 = scalar_lea.sflag [#allocation6], %s934_s14 }
 0x21a   : > { %p1111_p9 = pnand %p1834_p5, %p1833_p3 }
 0x21c   : > { %1329 = dma.done.wait (!%p1111_p9), %s935_s11, 128  }
 0x21d   : > { %1331 = vsyncadd (!%p1111_p9), %s935_s11, 4294967168  ;;  %s21_s20 = sadd.s32 1, %s1354_s20   ;;  %s1835_s15 = smov %s1338_s16 }
 0x21e   : > { %p18_p11 = scmp.ge.s32.totalorder %s21_s20, 4   ;;  %s1836_s16 = smov %s1342_s17 }
 0x21f   : > { %s1837_s17 = smov %s1539_s22  ;;  %s1838_s18 = smov %s1350_s19 }
 0x220   : > { %s1839_s19 = smov %s1841_s5  ;;  %20 = sbr.rel (!%p18_p11) target bundleno = 7 (0x7), region = 97 }
 0x227   :  { %940 = vsyncpa [#allocation5], 1 }
 0x228   :  { %942 = vsyncpa [#allocation5 + $0x1], 1 }
 0x229   :  { %943 = vsyncpa [#allocation8], 1 }
 0x22a   :  { %944 = vsyncpa [#allocation6], 1 }
 0x22b   :  { %946 = vsyncpa [#allocation6 + $0x1], 1 }

</bundles_post_ra>
